<compile_context>
chip_gen: v6e
topology: v6e:2x2x1
jax: 0.10.0
libtpu: 0.0.40
codegen_flags: <defaults>
</compile_context>

<pallas_src>
import functools
import math

import jax
import jax.numpy as jnp
from jax import lax
from jax.experimental import pallas as pl
from jax.experimental.pallas import tpu as pltpu

INPUT_SIZE = 32
OUTPUT_SIZE = 64
DROPOUT_RATE = 0.1
LN_EPS = 1e-5
# Logical rows packed per 128/256-lane output row.  PACK=4 -> lane-dense x
# (128 lanes) and a 256-lane output that maps onto one 256x256 MXU tile on
# v6e/v7x.  Use PACK=2 on v5e (128x128 MXU).
PACK = 4
TRAINING = False    # eval() mode: dropout is identity (matches PyTorch)


def dense_block_kernel(seed_ref, x_ref, w_ref, p_ref, m_ref, o_ref, *,
                       width, dropout_rate, training, eps):
    # ---- Linear + per-half LayerNorm mean in ONE matmul ----
    # w_ref = [W_blk | W_blk @ (block-diag ones / feat)], so columns
    # [0, width) are the linear output and [width, 2*width) are the per-half
    # row means, already broadcast across each 64-lane half.
    yf = jnp.dot(x_ref[...], w_ref[...], preferred_element_type=jnp.float32)
    y = yf[:, :width] + p_ref[0:1, :]          # + bias
    mean = yf[:, width:] + p_ref[1:2, :]       # + mean(bias)
    yc = y - mean

    # ---- Variance: single reduction matmul (MXU), m_ref pre-scaled by 1/feat ----
    var = jnp.dot(yc * yc, m_ref[...], preferred_element_type=jnp.float32)
    scale = lax.rsqrt(var + eps) * p_ref[2:3, :]   # gamma folded into the scale
    y = yc * scale + p_ref[3:4, :]                 # + beta  (single FMA)

    # ---- ReLU ----
    y = jnp.maximum(y, 0.0)

    # ---- Dropout (training only; eval mode == identity) ----
    if training and dropout_rate > 0.0:
        # TODO(synk): PyTorch's dropout RNG stream is not reproducible here; TPU
        # hardware PRNG with identical Bernoulli-keep / 1/(1-p) scale semantics,
        # and the stream depends on the tile size via program_id.
        pltpu.prng_seed(seed_ref[0] + pl.program_id(0))
        bits = pltpu.bitcast(pltpu.prng_random_bits(y.shape), jnp.uint32)
        thresh = jnp.uint32(min(int(dropout_rate * 4294967296.0), 4294967295))
        keep = bits >= thresh                      # P(keep) = 1 - dropout_rate
        y = jnp.where(keep, y * (1.0 / (1.0 - dropout_rate)), 0.0)

    o_ref[...] = y.astype(o_ref.dtype)


def dense_block(x, w, b, gamma, beta, seed=0, *, tm_packed=4096,
                dropout_rate=DROPOUT_RATE, training=TRAINING,
                out_dtype=jnp.float32):
    """x: (N, d_in) f32; w: (d_in, d_out); b/gamma/beta: (d_out,)."""
    n, d_in = x.shape
    feat = w.shape[1]
    width = PACK * feat

    # ---- pack PACK logical rows per output row (lane-dense I/O) ----
    # Only pad by < PACK rows for the packing reshape; the tile remainder is
    # handled by Pallas partial-block clipping (no full-array pad copy).
    n_pack = PACK * (-(-n // PACK))
    if n_pack != n:
        x = jnp.pad(x, ((0, n_pack - n), (0, 0)))
    n_p = n_pack // PACK
    x_packed = x.astype(jnp.float32).reshape(n_p, PACK * d_in)

    # ---- row tile: big (amortize per-step overhead) but keep grid >= 2 when
    # possible so ("parallel",) can shard rows across v7x's two TensorCores.
    tm = min(int(tm_packed), ((-(-n_p // 2) + 7) // 8) * 8)
    tm = max(8, (tm // 8) * 8)
    if tm >= n_p:
        tm = n_p                      # single block == full first dim (allowed)
    grid = -(-n_p // tm)

    # ---- block-diagonal weight, augmented with per-half column-mean columns ----
    w = w.astype(jnp.float32)
    w_blk = jnp.zeros((PACK * d_in, width), jnp.float32)
    for i in range(PACK):
        w_blk = w_blk.at[i * d_in:(i + 1) * d_in, i * feat:(i + 1) * feat].set(w)
    col = lax.broadcasted_iota(jnp.int32, (width, width), 1)
    row = lax.broadcasted_iota(jnp.int32, (width, width), 0)
    m_scaled = ((col // feat) == (row // feat)).astype(jnp.float32) * (1.0 / feat)
    w_aug = jnp.concatenate([w_blk, w_blk @ m_scaled], axis=1)   # (PACK*d_in, 2*width)

    # Merged per-feature params: [bias, mean(bias), gamma, beta], packed width.
    params = jnp.stack([
        jnp.tile(b, PACK),
        jnp.broadcast_to(jnp.mean(b), (width,)),
        jnp.tile(gamma, PACK),
        jnp.tile(beta, PACK),
    ]).astype(jnp.float32)

    seed_arr = jnp.asarray([seed], dtype=jnp.int32)

    kernel = functools.partial(dense_block_kernel, width=width,
                               dropout_rate=dropout_rate, training=training,
                               eps=LN_EPS)

    out_packed = pl.pallas_call(
        kernel,
        out_shape=jax.ShapeDtypeStruct((n_p, width), out_dtype),
        grid_spec=pltpu.PrefetchScalarGridSpec(
            num_scalar_prefetch=1,                        # dropout seed -> SMEM
            grid=(grid,),
            in_specs=[
                pl.BlockSpec((tm, PACK * d_in), lambda i, s: (i, 0)),        # x
                pl.BlockSpec((PACK * d_in, 2 * width), lambda i, s: (0, 0)),  # W_aug
                pl.BlockSpec((4, width), lambda i, s: (0, 0)),               # params
                pl.BlockSpec((width, width), lambda i, s: (0, 0)),           # M/feat
            ],
            out_specs=pl.BlockSpec((tm, width), lambda i, s: (i, 0)),
        ),
        compiler_params=pltpu.CompilerParams(
            dimension_semantics=("parallel",),            # megacore sharding
            vmem_limit_bytes=48 * 1024 * 1024),           # <= v7x 64 MiB physical
    )(seed_arr, x_packed, w_aug, params, m_scaled)

    # Unpack: packed row i holds logical rows PACK*i .. PACK*i+PACK-1.
    return out_packed.reshape(n_pack, feat)[:n]


def reference(x, w, b, gamma, beta):
    y = x @ w + b
    mean = y.mean(axis=-1, keepdims=True)
    var = ((y - mean) ** 2).mean(axis=-1, keepdims=True)
    y = (y - mean) / jnp.sqrt(var + LN_EPS)
    y = y * gamma + beta
    return jnp.maximum(y, 0.0)           # eval-mode dropout == identity


if __name__ == "__main__":
    key = jax.random.PRNGKey(0)
    kx, kw, kb = jax.random.split(key, 3)

    batch = 16
    x = jax.random.normal(kx, (batch, INPUT_SIZE), dtype=jnp.float32)

    # nn.Linear default init: uniform(-1/sqrt(fan_in), 1/sqrt(fan_in));
    # LayerNorm affine = (1, 0).
    bound = 1.0 / math.sqrt(INPUT_SIZE)
    w = jax.random.uniform(kw, (INPUT_SIZE, OUTPUT_SIZE),
                           minval=-bound, maxval=bound, dtype=jnp.float32)
    b = jax.random.uniform(kb, (OUTPUT_SIZE,),
                           minval=-bound, maxval=bound, dtype=jnp.float32)
    gamma = jnp.ones((OUTPUT_SIZE,), dtype=jnp.float32)
    beta = jnp.zeros((OUTPUT_SIZE,), dtype=jnp.float32)

    out = jax.block_until_ready(dense_block(x, w, b, gamma, beta, seed=0))
    ref = reference(x, w, b, gamma, beta)
    assert out.shape == (batch, OUTPUT_SIZE)
    assert jnp.allclose(out, ref, atol=1e-5, rtol=1e-5)

    # Ragged batches: not a multiple of PACK (13) and a multi-step grid with a
    # partial tail tile (100).
    for nb in (13, 100):
        xb = jax.random.normal(kx, (nb, INPUT_SIZE), dtype=jnp.float32)
        ob = jax.block_until_ready(dense_block(xb, w, b, gamma, beta, seed=0))
        rb = reference(xb, w, b, gamma, beta)
        assert ob.shape == (nb, OUTPUT_SIZE)
        assert jnp.allclose(ob, rb, atol=1e-5, rtol=1e-5)

    print("KERNEL_OK")
</pallas_src>

<mosaic_0001>
module attributes {stable_mosaic.version = 11 : i64} {
  func.func @dense_block_kernel(%arg0: i32, %arg1: memref<1xi32, #tpu.memory_space<smem>>, %arg2: memref<4x128xf32, #tpu.memory_space<vmem>>, %arg3: memref<128x512xf32, #tpu.memory_space<vmem>>, %arg4: memref<4x256xf32, #tpu.memory_space<vmem>>, %arg5: memref<256x256xf32, #tpu.memory_space<vmem>>, %arg6: memref<4x256xf32, #tpu.memory_space<vmem>>) attributes {dimension_semantics = [#tpu.dimension_semantics<parallel>], iteration_bounds = array<i64: 1>, scalar_prefetch = 1 : i64, scratch_operands = 0 : i64, tpu.core_type = #tpu.core_type<tc>, window_params = [{transform_indices = @transform_0, window_bounds = array<i64: 4, 128>}, {pipeline_mode = #tpu.pipeline_mode<synchronous>, transform_indices = @transform_1, window_bounds = array<i64: 128, 512>}, {pipeline_mode = #tpu.pipeline_mode<synchronous>, transform_indices = @transform_2, window_bounds = array<i64: 4, 256>}, {pipeline_mode = #tpu.pipeline_mode<synchronous>, transform_indices = @transform_3, window_bounds = array<i64: 256, 256>}, {transform_indices = @transform_4, window_bounds = array<i64: 4, 256>}]} {
    %c0 = arith.constant 0 : index
    %c0_0 = arith.constant 0 : index
    %0 = vector.load %arg2[%c0, %c0_0] : memref<4x128xf32, #tpu.memory_space<vmem>>, vector<4x128xf32>
    %c0_1 = arith.constant 0 : index
    %c0_2 = arith.constant 0 : index
    %1 = vector.load %arg3[%c0_1, %c0_2] : memref<128x512xf32, #tpu.memory_space<vmem>>, vector<128x512xf32>
    %cst = arith.constant dense<0.000000e+00> : vector<4x512xf32>
    %2 = tpu.matmul %0, %1, %cst {dimension_numbers = #tpu.dot_dimension_numbers<[1], [0], [0], [1], [0, 0, 1, 1], [], []>} : vector<4x128xf32>, vector<128x512xf32>, vector<4x512xf32> -> vector<4x512xf32>
    %3 = vector.extract_strided_slice %2 {offsets = [0, 0], sizes = [4, 256], strides = [1, 1]} : vector<4x512xf32> to vector<4x256xf32>
    %c0_3 = arith.constant 0 : index
    %c0_4 = arith.constant 0 : index
    %4 = vector.load %arg4[%c0_3, %c0_4] : memref<4x256xf32, #tpu.memory_space<vmem>>, vector<1x256xf32>
    %5 = vector.broadcast %4 : vector<1x256xf32> to vector<4x256xf32>
    %6 = arith.addf %3, %5 : vector<4x256xf32>
    %7 = vector.extract_strided_slice %2 {offsets = [0, 256], sizes = [4, 256], strides = [1, 1]} : vector<4x512xf32> to vector<4x256xf32>
    %c1 = arith.constant 1 : index
    %c0_5 = arith.constant 0 : index
    %8 = vector.load %arg4[%c1, %c0_5] : memref<4x256xf32, #tpu.memory_space<vmem>>, vector<1x256xf32>
    %9 = vector.broadcast %8 : vector<1x256xf32> to vector<4x256xf32>
    %10 = arith.addf %7, %9 : vector<4x256xf32>
    %11 = arith.subf %6, %10 : vector<4x256xf32>
    %12 = arith.mulf %11, %11 : vector<4x256xf32>
    %c0_6 = arith.constant 0 : index
    %c0_7 = arith.constant 0 : index
    %13 = vector.load %arg5[%c0_6, %c0_7] : memref<256x256xf32, #tpu.memory_space<vmem>>, vector<256x256xf32>
    %cst_8 = arith.constant dense<0.000000e+00> : vector<4x256xf32>
    %14 = tpu.matmul %12, %13, %cst_8 {dimension_numbers = #tpu.dot_dimension_numbers<[1], [0], [0], [1], [0, 0, 1, 1], [], []>} : vector<4x256xf32>, vector<256x256xf32>, vector<4x256xf32> -> vector<4x256xf32>
    %cst_9 = arith.constant 9.99999974E-6 : f32
    %15 = vector.broadcast %cst_9 : f32 to vector<4x256xf32>
    %16 = arith.addf %14, %15 : vector<4x256xf32>
    %17 = math.rsqrt %16 : vector<4x256xf32>
    %c2 = arith.constant 2 : index
    %c0_10 = arith.constant 0 : index
    %18 = vector.load %arg4[%c2, %c0_10] : memref<4x256xf32, #tpu.memory_space<vmem>>, vector<1x256xf32>
    %19 = vector.broadcast %18 : vector<1x256xf32> to vector<4x256xf32>
    %20 = arith.mulf %17, %19 : vector<4x256xf32>
    %21 = arith.mulf %11, %20 : vector<4x256xf32>
    %c3 = arith.constant 3 : index
    %c0_11 = arith.constant 0 : index
    %22 = vector.load %arg4[%c3, %c0_11] : memref<4x256xf32, #tpu.memory_space<vmem>>, vector<1x256xf32>
    %23 = vector.broadcast %22 : vector<1x256xf32> to vector<4x256xf32>
    %24 = arith.addf %21, %23 : vector<4x256xf32>
    %cst_12 = arith.constant 0.000000e+00 : f32
    %25 = vector.broadcast %cst_12 : f32 to vector<4x256xf32>
    %26 = arith.maximumf %24, %25 : vector<4x256xf32>
    %c0_13 = arith.constant 0 : index
    %c0_14 = arith.constant 0 : index
    %27 = vector.load %arg6[%c0_13, %c0_14] : memref<4x256xf32, #tpu.memory_space<vmem>>, vector<4x256xf32>
    tpu.vector_store %arg6[%c0_13, %c0_14], %26 {strides = array<i32>} : memref<4x256xf32, #tpu.memory_space<vmem>>, vector<4x256xf32>,
    return
  }
  func.func @transform_0(%arg0: i32, %arg1: memref<1xi32, #tpu.memory_space<smem>>) -> (i32, i32) {
    %c0_i32 = arith.constant 0 : i32
    %c0_i32_0 = arith.constant 0 : i32
    return %arg0, %c0_i32 : i32, i32
  }
  func.func @transform_1(%arg0: i32, %arg1: memref<1xi32, #tpu.memory_space<smem>>) -> (i32, i32) {
    %c0_i32 = arith.constant 0 : i32
    %c0_i32_0 = arith.constant 0 : i32
    %c0_i32_1 = arith.constant 0 : i32
    return %c0_i32, %c0_i32_0 : i32, i32
  }
  func.func @transform_2(%arg0: i32, %arg1: memref<1xi32, #tpu.memory_space<smem>>) -> (i32, i32) {
    %c0_i32 = arith.constant 0 : i32
    %c0_i32_0 = arith.constant 0 : i32
    %c0_i32_1 = arith.constant 0 : i32
    return %c0_i32, %c0_i32_0 : i32, i32
  }
  func.func @transform_3(%arg0: i32, %arg1: memref<1xi32, #tpu.memory_space<smem>>) -> (i32, i32) {
    %c0_i32 = arith.constant 0 : i32
    %c0_i32_0 = arith.constant 0 : i32
    %c0_i32_1 = arith.constant 0 : i32
    return %c0_i32, %c0_i32_0 : i32, i32
  }
  func.func @transform_4(%arg0: i32, %arg1: memref<1xi32, #tpu.memory_space<smem>>) -> (i32, i32) {
    %c0_i32 = arith.constant 0 : i32
    %c0_i32_0 = arith.constant 0 : i32
    return %arg0, %c0_i32 : i32, i32
  }
}

</mosaic_0001>

<bundles_post_ra>
// kernel: tpu_custom_call.1
= control target key start
LH: loop header
LB: loop body
LE: loop exit
PB: predicated region body
PF: predicated region fallthrough
CT: control target
= control target key end

     0   :  { %11 = vsyncpa [#allocation5], 0  ;;  %s687_s0 = inlined_call_operand.<no memory space> [shape: s32[1], index: 0, kind: input, shape index: {}]   ;;  %s688_s1 = inlined_call_operand.hbm [shape: f32[4,128], index: 1, kind: input, shape index: {}]   ;;  %s689_s2 = inlined_call_operand.hbm [shape: f32[128,512], index: 2, kind: input, shape index: {}]   ;;  %s690_s3 = inlined_call_operand.hbm [shape: f32[4,256], index: 3, kind: input, shape index: {}]   ;;  %s691_s4 = inlined_call_operand.hbm [shape: f32[256,256], index: 4, kind: input, shape index: {}]   ;;  %s692_s5 = inlined_call_operand.hbm [shape: f32[4,256], index: 5, kind: output, shape index: {}]  }
   0x1   :  { %12 = vsyncpa [#allocation8], 0 }
   0x2   :  { %13 = vsyncpa [#allocation11], 0 }
   0x3   :  { %14 = vsyncpa [#allocation6], 0  ;;  %s626_s0 = smov [#allocation7]  }
   0x4   :  { %s30_s18 = sshll.u32 %s626_s0, 4  ;;  %s31_s18 = int_to_ptr.vmem [resolvable:$true] %s30_s18 }
   0x5   :  { %s526_s19 = scalar_lea.vmem %s31_s18, 8192  ;;  %p531_p1 = scmp.lt.s32.totalorder %s31_s18, %s31_s18 }
   0x6   :  { %p527_p0 = scmp.ne.s32.totalorder %s31_s18, %s526_s19  ;;  %p532_p2 = scmp.lt.s32.totalorder %s526_s19, %s526_s19 }
   0x8   :  { %p533_p3 = por %p532_p2, %p531_p1 }
   0xa   :  { %p534_p4 = pnand %p533_p3, %p527_p0 }
   0xc   :  { %537 = shalt.err (!%p534_p4)
}
   0xd   :  { %s627_s20 = smov 512   ;;  %s628_s21 = smov 32  }
   0xe   :  { %36 = dma.hbm_to_vmem [thread:$0]  %s689_s2, 8192, %s31_s18, [#allocation8], %s627_s20, %s627_s20, %s628_s21  }
   0xf   :  { %s629_s24 = smov [#allocation4]   ;;  %s630_s26 = smov [#allocation9]  }
  0x10   :  { %s21_s25 = sshll.u32 %s629_s24, 4  ;;  %s43_s27 = sshll.u32 %s630_s26, 4  ;;  %s22_s25 = int_to_ptr.vmem [resolvable:$true] %s21_s25  ;;  %s44_s27 = int_to_ptr.vmem [resolvable:$true] %s43_s27 }
  0x11   :  { %s546_s28 = scalar_lea.vmem %s22_s25, 64  ;;  %p551_p6 = scmp.lt.s32.totalorder %s22_s25, %s22_s25 }
  0x12   :  { %p547_p5 = scmp.ne.s32.totalorder %s22_s25, %s546_s28  ;;  %p552_p7 = scmp.lt.s32.totalorder %s546_s28, %s546_s28 }
  0x14   :  { %p553_p8 = por %p552_p7, %p551_p6 }
  0x16   :  { %p554_p9 = pnand %p553_p8, %p547_p5 }
  0x18   :  { %557 = shalt.err (!%p554_p9)
}
  0x19   :  { %24 = dma.hbm_to_vmem [thread:$0]  %s688_s1, 64, %s22_s25, [#allocation5]  }
  0x1a   :  { %s566_s6 = scalar_lea.vmem %s44_s27, 128  ;;  %p571_p11 = scmp.lt.s32.totalorder %s44_s27, %s44_s27 }
  0x1b   :  { %p567_p10 = scmp.ne.s32.totalorder %s44_s27, %s566_s6  ;;  %p572_p12 = scmp.lt.s32.totalorder %s566_s6, %s566_s6 }
  0x1d   :  { %p573_p13 = por %p572_p12, %p571_p11 }
  0x1f   :  { %p574_p0 = pnand %p573_p13, %p567_p10 }
  0x21   :  { %577 = shalt.err (!%p574_p0)
}
  0x22   :  { %46 = dma.hbm_to_vmem [thread:$0]  %s690_s3, 128, %s44_s27, [#allocation8]  }
  0x23   :  { %s631_s8 = smov [#allocation10]  }
  0x24   :  { %s52_s9 = sshll.u32 %s631_s8, 4  ;;  %s53_s9 = int_to_ptr.vmem [resolvable:$true] %s52_s9 }
  0x25   :  { %s586_s10 = scalar_lea.vmem %s53_s9, 8192  ;;  %p591_p2 = scmp.lt.s32.totalorder %s53_s9, %s53_s9 }
  0x26   :  { %p587_p1 = scmp.ne.s32.totalorder %s53_s9, %s586_s10  ;;  %p592_p3 = scmp.lt.s32.totalorder %s586_s10, %s586_s10 }
  0x28   :  { %p593_p4 = por %p592_p3, %p591_p2 }
  0x2a   :  { %p594_p5 = pnand %p593_p4, %p587_p1 }
  0x2c   :  { %597 = shalt.err (!%p594_p5)
}
  0x2d   :  { %s632_s1 = smov 256   ;;  %s633_s11 = smov 16  }
  0x2e   :  { %58 = dma.hbm_to_vmem [thread:$0]  %s691_s4, 8192, %s53_s9, [#allocation11], %s632_s1, %s632_s1, %s633_s11  }
  0x2f   :  { %618 = dma.done.wait [#allocation5], 64  }
  0x30   :  { %619 = vsyncadd [#allocation5], 4294967232 }
  0x31   :  { %620 = dma.done.wait [#allocation8], 8320  }
  0x32   :  { %621 = vsyncadd [#allocation8], 4294958976 }
  0x33   :  { %622 = dma.done.wait [#allocation11], 8192  }
  0x34   :  { %623 = vsyncadd [#allocation11], 4294959104  ;;  %v634_v0 = vmov 0.0   ;;  %v133_v1 = vld [vmem:[#allocation7 + $0x1e8] sm:$0xff]  ;;  %v132_v2 = vld [vmem:[#allocation7 + $0x1e0] sm:$0xff]  ;;  %s635_s3 = smov [#allocation12]  }
  0x35   :  { %200 = vmatprep.mubr.f32.mxu1 %v634_v0  ;;  %v129_v3 = vld [vmem:[#allocation7 + $0x1c8] sm:$0xff]  ;;  %136 = vmatprep.subr.mxu1 %v133_v1  ;;  %v128_v4 = vld [vmem:[#allocation7 + $0x1c0] sm:$0xff]  ;;  %v341_v27 = vld [vmem:[#allocation10 + $0xf0] sm:$0xff]  ;;  %s493_s4 = sshll.u32 %s635_s3, 4  ;;  %s494_s4 = int_to_ptr.vmem [resolvable:$true] %s493_s4 }
  0x36   :  { %137 = vmatpush1.msra.mxu1 %v132_v2  ;;  %v125_v5 = vld [vmem:[#allocation7 + $0x1a8] sm:$0xff]  ;;  %v124_v6 = vld [vmem:[#allocation7 + $0x1a0] sm:$0xff]  ;;  %v340_v28 = vld [vmem:[#allocation10 + $0xe8] sm:$0xff]  ;;  %s598_s14 = scalar_lea.vmem %s494_s4, 128  ;;  %p603_p7 = scmp.lt.s32.totalorder %s494_s4, %s494_s4 }
  0x37   :  { %138 = vmatprep.subr.mxu1 %v129_v3  ;;  %v121_v7 = vld [vmem:[#allocation7 + $0x188] sm:$0xff]  ;;  %v120_v8 = vld [vmem:[#allocation7 + $0x180] sm:$0xff]  ;;  %v337_v33 = vld [vmem:[#allocation10 + $0xd0] sm:$0xff]  ;;  %p599_p6 = scmp.ne.s32.totalorder %s494_s4, %s598_s14  ;;  %p604_p8 = scmp.lt.s32.totalorder %s598_s14, %s598_s14 }
  0x38   :  { %139 = vmatpush1.msra.mxu1 %v128_v4  ;;  %v117_v9 = vld [vmem:[#allocation7 + $0x168] sm:$0xff]  ;;  %v116_v10 = vld [vmem:[#allocation7 + $0x160] sm:$0xff]  ;;  %v336_v35 = vld [vmem:[#allocation10 + $0xc8] sm:$0xff] }
  0x39   :  { %140 = vmatprep.subr.mxu1 %v125_v5  ;;  %v113_v11 = vld [vmem:[#allocation7 + $0x148] sm:$0xff]  ;;  %v112_v12 = vld [vmem:[#allocation7 + $0x140] sm:$0xff]  ;;  %v333_v41 = vld [vmem:[#allocation10 + $0xb0] sm:$0xff]  ;;  %p605_p9 = por %p604_p8, %p603_p7 }
  0x3a   :  { %141 = vmatpush1.msra.mxu1 %v124_v6  ;;  %v109_v13 = vld [vmem:[#allocation7 + $0x128] sm:$0xff]  ;;  %v108_v14 = vld [vmem:[#allocation7 + $0x120] sm:$0xff]  ;;  %v332_v43 = vld [vmem:[#allocation10 + $0xa8] sm:$0xff] }
  0x3b   :  { %142 = vmatprep.subr.mxu1 %v121_v7  ;;  %v105_v15 = vld [vmem:[#allocation7 + $0x108] sm:$0xff]  ;;  %v104_v16 = vld [vmem:[#allocation7 + $0x100] sm:$0xff]  ;;  %v679_v44 = vld [vmem:[#allocation4] sm:$0xf]  ;;  %p606_p10 = pnand %p605_p9, %p599_p6 }
  0x3c   :  { %143 = vmatpush1.msra.mxu1 %v120_v8  ;;  %v101_v17 = vld [vmem:[#allocation7 + $0xe8] sm:$0xff]  ;;  %v100_v18 = vld [vmem:[#allocation7 + $0xe0] sm:$0xff]  ;;  %v135_v45 = vld [vmem:[#allocation7 + $0x1f8] sm:$0xff] }
  0x3d   :  { %144 = vmatprep.subr.mxu1 %v117_v9  ;;  %v97_v19 = vld [vmem:[#allocation7 + $0xc8] sm:$0xff]  ;;  %v96_v20 = vld [vmem:[#allocation7 + $0xc0] sm:$0xff]  ;;  %v134_v46 = vld [vmem:[#allocation7 + $0x1f0] sm:$0xff] }
  0x3e   :  { %145 = vmatpush1.msra.mxu1 %v116_v10  ;;  %v93_v21 = vld [vmem:[#allocation7 + $0xa8] sm:$0xff]  ;;  %v92_v22 = vld [vmem:[#allocation7 + $0xa0] sm:$0xff]  ;;  %v131_v47 = vld [vmem:[#allocation7 + $0x1d8] sm:$0xff] }
  0x3f   :  { %146 = vmatprep.subr.mxu1 %v113_v11  ;;  %v89_v23 = vld [vmem:[#allocation7 + $0x88] sm:$0xff]  ;;  %v88_v24 = vld [vmem:[#allocation7 + $0x80] sm:$0xff]  ;;  %v130_v49 = vld [vmem:[#allocation7 + $0x1d0] sm:$0xff] }
  0x40   :  { %147 = vmatpush1.msra.mxu1 %v112_v12  ;;  %v85_v25 = vld [vmem:[#allocation7 + $0x68] sm:$0xff]  ;;  %v342_v26 = vld [vmem:[#allocation10 + $0xf8] sm:$0xff]  ;;  %v127_v51 = vld [vmem:[#allocation7 + $0x1b8] sm:$0xff] }
  0x41   :  { %148 = vmatprep.subr.mxu1 %v109_v13  ;;  %375 = vmatprep.subr.mxu0 %v342_v26  ;;  %v339_v29 = vld [vmem:[#allocation10 + $0xe0] sm:$0xff]  ;;  %v84_v30 = vld [vmem:[#allocation7 + $0x60] sm:$0xff]  ;;  %v329_v52 = vld [vmem:[#allocation10 + $0x90] sm:$0xff] }
  0x42   :  { %149 = vmatpush1.msra.mxu1 %v108_v14  ;;  %376 = vmatpush1.msra.mxu0 %v341_v27  ;;  %v338_v31 = vld [vmem:[#allocation10 + $0xd8] sm:$0xff]  ;;  %v81_v32 = vld [vmem:[#allocation7 + $0x48] sm:$0xff]  ;;  %v126_v53 = vld [vmem:[#allocation7 + $0x1b0] sm:$0xff] }
  0x43   :  { %150 = vmatprep.subr.mxu1 %v105_v15  ;;  %377 = vmatprep.subr.mxu0 %v340_v28  ;;  %v80_v34 = vld [vmem:[#allocation7 + $0x40] sm:$0xff]  ;;  %v77_v36 = vld [vmem:[#allocation7 + $0x28] sm:$0xff]  ;;  %v328_v54 = vld [vmem:[#allocation10 + $0x88] sm:$0xff] }
  0x44   :  { %151 = vmatpush1.msra.mxu1 %v104_v16  ;;  %378 = vmatpush1.msra.mxu0 %v339_v29  ;;  %v335_v37 = vld [vmem:[#allocation10 + $0xc0] sm:$0xff]  ;;  %v76_v38 = vld [vmem:[#allocation7 + $0x20] sm:$0xff]  ;;  %v123_v55 = vld [vmem:[#allocation7 + $0x198] sm:$0xff] }
  0x45   :  { %152 = vmatprep.subr.mxu1 %v101_v17  ;;  %379 = vmatprep.subr.mxu0 %v338_v31  ;;  %v334_v39 = vld [vmem:[#allocation10 + $0xb8] sm:$0xff]  ;;  %v73_v40 = vld [vmem:[#allocation7 + $0x8] sm:$0xff]  ;;  %v122_v57 = vld [vmem:[#allocation7 + $0x190] sm:$0xff] }
  0x46   :  { %153 = vmatpush1.msra.mxu1 %v100_v18  ;;  %380 = vmatpush1.msra.mxu0 %v337_v33  ;;  %v72_v42 = vld [vmem:[#allocation7] sm:$0xff]  ;;  %v331_v48 = vld [vmem:[#allocation10 + $0xa0] sm:$0xff]  ;;  %v119_v59 = vld [vmem:[#allocation7 + $0x178] sm:$0xff] }
  0x47   :  { %154 = vmatprep.subr.mxu1 %v97_v19  ;;  %381 = vmatprep.subr.mxu0 %v336_v35  ;;  %v330_v50 = vld [vmem:[#allocation10 + $0x98] sm:$0xff]  ;;  %v327_v56 = vld [vmem:[#allocation10 + $0x80] sm:$0xff]  ;;  %v325_v60 = vld [vmem:[#allocation10 + $0x70] sm:$0xff] }
  0x48   :  { %155 = vmatpush1.msra.mxu1 %v96_v20  ;;  %382 = vmatpush1.msra.mxu0 %v335_v37  ;;  %v326_v58 = vld [vmem:[#allocation10 + $0x78] sm:$0xff]  ;;  %v118_v61 = vld [vmem:[#allocation7 + $0x170] sm:$0xff]  ;;  %v115_v63 = vld [vmem:[#allocation7 + $0x158] sm:$0xff] }
  0x49   :  { %156 = vmatprep.subr.mxu1 %v93_v21  ;;  %383 = vmatprep.subr.mxu0 %v334_v39  ;;  %v324_v62 = vld [vmem:[#allocation10 + $0x68] sm:$0xff]  ;;  %v322_v2 = vld [vmem:[#allocation10 + $0x58] sm:$0xff]  ;;  %v111_v3 = vld [vmem:[#allocation7 + $0x138] sm:$0xff] }
  0x4a   :  { %157 = vmatpush1.msra.mxu1 %v92_v22  ;;  %384 = vmatpush1.msra.mxu0 %v333_v41  ;;  %v114_v1 = vld [vmem:[#allocation7 + $0x150] sm:$0xff]  ;;  %v321_v4 = vld [vmem:[#allocation10 + $0x50] sm:$0xff]  ;;  %v318_v26 = vld [vmem:[#allocation10 + $0x38] sm:$0xff] }
  0x4b   :  { %158 = vmatprep.subr.mxu1 %v89_v23  ;;  %385 = vmatprep.subr.mxu0 %v332_v43  ;;  %v110_v5 = vld [vmem:[#allocation7 + $0x130] sm:$0xff]  ;;  %v107_v6 = vld [vmem:[#allocation7 + $0x118] sm:$0xff]  ;;  %v315_v29 = vld [vmem:[#allocation10 + $0x20] sm:$0xff] }
  0x4c   :  { %159 = vmatpush1.msra.mxu1 %v88_v24  ;;  %386 = vmatpush1.msra.mxu0 %v331_v48  ;;  %v106_v7 = vld [vmem:[#allocation7 + $0x110] sm:$0xff]  ;;  %v103_v8 = vld [vmem:[#allocation7 + $0xf8] sm:$0xff]  ;;  %v311_v33 = vld [vmem:[#allocation10] sm:$0xff] }
  0x4d   :  { %160 = vmatprep.subr.mxu1 %v85_v25  ;;  %387 = vmatprep.subr.mxu0 %v330_v50  ;;  %v102_v9 = vld [vmem:[#allocation7 + $0xf0] sm:$0xff]  ;;  %v99_v10 = vld [vmem:[#allocation7 + $0xd8] sm:$0xff]  ;;  %v319_v25 = vld [vmem:[#allocation10 + $0x40] sm:$0xff] }
  0x4e   :  { %161 = vmatpush1.msra.mxu1 %v84_v30  ;;  %388 = vmatpush1.msra.mxu0 %v329_v52  ;;  %v98_v11 = vld [vmem:[#allocation7 + $0xd0] sm:$0xff]  ;;  %v95_v12 = vld [vmem:[#allocation7 + $0xb8] sm:$0xff]  ;;  %v314_v30 = vld [vmem:[#allocation10 + $0x18] sm:$0xff] }
  0x4f   :  { %162 = vmatprep.subr.mxu1 %v81_v32  ;;  %389 = vmatprep.subr.mxu0 %v328_v54  ;;  %v94_v13 = vld [vmem:[#allocation7 + $0xb0] sm:$0xff]  ;;  %v91_v14 = vld [vmem:[#allocation7 + $0x98] sm:$0xff]  ;;  %v371_v37 = vld [vmem:[#allocation10 + $0x1e0] sm:$0xff] }
  0x50   :  { %163 = vmatpush1.msra.mxu1 %v80_v34  ;;  %390 = vmatpush1.msra.mxu0 %v327_v56  ;;  %v90_v15 = vld [vmem:[#allocation7 + $0x90] sm:$0xff]  ;;  %v87_v16 = vld [vmem:[#allocation7 + $0x78] sm:$0xff]  ;;  %v374_v34 = vld [vmem:[#allocation10 + $0x1f8] sm:$0xff] }
  0x51   :  { %164 = vmatprep.subr.mxu1 %v77_v36  ;;  %391 = vmatprep.subr.mxu0 %v326_v58  ;;  %v86_v17 = vld [vmem:[#allocation7 + $0x70] sm:$0xff]  ;;  %v83_v18 = vld [vmem:[#allocation7 + $0x58] sm:$0xff]  ;;  %v367_v41 = vld [vmem:[#allocation10 + $0x1c0] sm:$0xff] }
  0x52   :  { %165 = vmatpush1.msra.mxu1 %v76_v38  ;;  %392 = vmatpush1.msra.mxu0 %v325_v60  ;;  %v82_v19 = vld [vmem:[#allocation7 + $0x50] sm:$0xff]  ;;  %v79_v20 = vld [vmem:[#allocation7 + $0x38] sm:$0xff]  ;;  %v370_v38 = vld [vmem:[#allocation10 + $0x1d8] sm:$0xff] }
  0x53   :  { %166 = vmatprep.subr.mxu1 %v73_v40  ;;  %393 = vmatprep.subr.mxu0 %v324_v62  ;;  %v78_v21 = vld [vmem:[#allocation7 + $0x30] sm:$0xff]  ;;  %v75_v22 = vld [vmem:[#allocation7 + $0x18] sm:$0xff]  ;;  %v358_v50 = vld [vmem:[#allocation10 + $0x178] sm:$0xff] }
  0x54   :  { %167 = vmatpush1.msra.mxu1 %v72_v42  ;;  %v74_v23 = vld [vmem:[#allocation7 + $0x10] sm:$0xff]  ;;  %v317_v27 = vld [vmem:[#allocation10 + $0x30] sm:$0xff]  ;;  %v366_v42 = vld [vmem:[#allocation10 + $0x1b8] sm:$0xff] }
  0x55   :  { %201 = vmatmul.mubr.f32.vlgmr.msra.gmra.mxu1 %v679_v44  ;;  %207 = vmatprep.subr.mxu1 %v135_v45  ;;  %v320_v24 = vld [vmem:[#allocation10 + $0x48] sm:$0xff]  ;;  %v313_v31 = vld [vmem:[#allocation10 + $0x10] sm:$0xff]  ;;  %v363_v45 = vld [vmem:[#allocation10 + $0x1a0] sm:$0xff] }
  0x56   :  { %208 = vmatpush1.msra.mxu1 %v134_v46  ;;  %271 = vmatprep.mubr.f32.mxu1 %v634_v0  ;;  %v323_v0 = vld [vmem:[#allocation10 + $0x60] sm:$0xff]  ;;  %v316_v28 = vld [vmem:[#allocation10 + $0x28] sm:$0xff]  ;;  %v373_v35 = vld [vmem:[#allocation10 + $0x1f0] sm:$0xff] }
  0x57   :  { %209 = vmatprep.subr.mxu1 %v131_v47  ;;  %394 = vmatpush1.msra.mxu0 %v323_v0  ;;  %v312_v32 = vld [vmem:[#allocation10 + $0x8] sm:$0xff]  ;;  %v369_v39 = vld [vmem:[#allocation10 + $0x1d0] sm:$0xff]  ;;  %v362_v46 = vld [vmem:[#allocation10 + $0x198] sm:$0xff] }
  0x58   :  { %210 = vmatpush1.msra.mxu1 %v130_v49  ;;  %395 = vmatprep.subr.mxu0 %v322_v2  ;;  %v372_v36 = vld [vmem:[#allocation10 + $0x1e8] sm:$0xff]  ;;  %v365_v43 = vld [vmem:[#allocation10 + $0x1b0] sm:$0xff]  ;;  %v359_v49 = vld [vmem:[#allocation10 + $0x180] sm:$0xff]  ;;  %v280_v2 = vlaneseq }
  0x59   :  { %211 = vmatprep.subr.mxu1 %v127_v51  ;;  %396 = vmatpush1.msra.mxu0 %v321_v4  ;;  %v368_v40 = vld [vmem:[#allocation10 + $0x1c8] sm:$0xff]  ;;  %v361_v47 = vld [vmem:[#allocation10 + $0x190] sm:$0xff]  ;;  %v354_v54 = vld [vmem:[#allocation10 + $0x158] sm:$0xff] }
  0x5a   :  { %212 = vmatpush1.msra.mxu1 %v126_v53  ;;  %397 = vmatprep.subr.mxu0 %v320_v24  ;;  %v360_v48 = vld [vmem:[#allocation10 + $0x188] sm:$0xff]  ;;  %v357_v51 = vld [vmem:[#allocation10 + $0x170] sm:$0xff]  ;;  %v355_v53 = vld [vmem:[#allocation10 + $0x160] sm:$0xff] }
  0x5b   :  { %213 = vmatprep.subr.mxu1 %v123_v55  ;;  %398 = vmatpush1.msra.mxu0 %v319_v25  ;;  %v356_v52 = vld [vmem:[#allocation10 + $0x168] sm:$0xff]  ;;  %v353_v55 = vld [vmem:[#allocation10 + $0x150] sm:$0xff]  ;;  %v350_v58 = vld [vmem:[#allocation10 + $0x138] sm:$0xff] }
  0x5c   :  { %214 = vmatpush1.msra.mxu1 %v122_v57  ;;  %399 = vmatprep.subr.mxu0 %v318_v26  ;;  %v352_v56 = vld [vmem:[#allocation10 + $0x148] sm:$0xff]  ;;  %v351_v57 = vld [vmem:[#allocation10 + $0x140] sm:$0xff]  ;;  %v346_v62 = vld [vmem:[#allocation10 + $0x118] sm:$0xff] }
  0x5d   :  { %215 = vmatprep.subr.mxu1 %v119_v59  ;;  %400 = vmatpush1.msra.mxu0 %v317_v27  ;;  %v349_v59 = vld [vmem:[#allocation10 + $0x130] sm:$0xff]  ;;  %v348_v60 = vld [vmem:[#allocation10 + $0x128] sm:$0xff] }
  0x5e   :  { %216 = vmatpush1.msra.mxu1 %v118_v61  ;;  %401 = vmatprep.subr.mxu0 %v316_v28  ;;  %v347_v61 = vld [vmem:[#allocation10 + $0x120] sm:$0xff]  ;;  %v344_v0 = vld [vmem:[#allocation10 + $0x108] sm:$0xff]  ;;  %v449_v28 = vld [vmem:[#allocation9 + $0x2] ss:$4 sm:$0x3] }
  0x5f   :  { %217 = vmatprep.subr.mxu1 %v115_v63  ;;  %402 = vmatpush1.msra.mxu0 %v315_v29  ;;  %v345_v63 = vld [vmem:[#allocation10 + $0x110] sm:$0xff] }
  0x60   :  { %218 = vmatpush1.msra.mxu1 %v114_v1  ;;  %403 = vmatprep.subr.mxu0 %v314_v30  ;;  %v343_v1 = vld [vmem:[#allocation10 + $0x100] sm:$0xff]  ;;  %v466_v30 = vld [vmem:[#allocation9 + $0x3] ss:$4 sm:$0x3] }
  0x61   :  { %219 = vmatprep.subr.mxu1 %v111_v3  ;;  %404 = vmatpush1.msra.mxu0 %v313_v31  ;;  %v281_v3 = vshrl.u32 %v280_v2, 7 }
  0x62   :  { %220 = vmatpush1.msra.mxu1 %v110_v5  ;;  %405 = vmatprep.subr.mxu0 %v312_v32 }
  0x63   :  { %221 = vmatprep.subr.mxu1 %v107_v6  ;;  %406 = vmatpush1.msra.mxu0 %v311_v33  ;;  %v282_v5 = vsub.s32 0, %v281_v3  ;;  %v293_v6 = vld [vmem:[#allocation9 + $0x1] ss:$4 sm:$0x3] }
  0x64   :  { %222 = vmatpush1.msra.mxu1 %v106_v7  ;;  %407 = vmatprep.subr.mxu0 %v374_v34  ;;  %v278_v7 = vld [vmem:[#allocation9] ss:$4 sm:$0x3] }
  0x65   :  { %223 = vmatprep.subr.mxu1 %v103_v8  ;;  %408 = vmatpush2.msra.mxu0 %v373_v35  ;;  %v286_v8 = vsub.s32 1, %v281_v3  ;;  %v454_v29 = vrot.slane %v449_v28, %v282_v5  ;;  %v471_v34 = vrot.slane %v466_v30, %v282_v5 }
  0x66   :  { %224 = vmatpush1.msra.mxu1 %v102_v9  ;;  %409 = vmatprep.subr.mxu0 %v372_v36  ;;  %v298_v9 = vrot.slane %v293_v6, %v282_v5 }
  0x67   :  { %225 = vmatprep.subr.mxu1 %v99_v10  ;;  %410 = vmatpush2.msra.mxu0 %v371_v37  ;;  %v283_v10 = vrot.slane %v278_v7, %v282_v5  ;;  %v458_v31 = vrot.slane %v449_v28, %v286_v8 }
  0x68   :  { %226 = vmatpush1.msra.mxu1 %v98_v11  ;;  %411 = vmatprep.subr.mxu0 %v370_v38  ;;  %v475_v38 = vrot.slane %v466_v30, %v286_v8 }
  0x69   :  { %227 = vmatprep.subr.mxu1 %v95_v12  ;;  %412 = vmatpush2.msra.mxu0 %v369_v39  ;;  %v287_v12 = vrot.slane %v278_v7, %v286_v8 }
  0x6a   :  { %228 = vmatpush1.msra.mxu1 %v94_v13  ;;  %413 = vmatprep.subr.mxu0 %v368_v40  ;;  %v302_v13 = vrot.slane %v293_v6, %v286_v8 }
  0x6b   :  { %229 = vmatprep.subr.mxu1 %v91_v14  ;;  %414 = vmatpush2.msra.mxu0 %v367_v41 }
  0x6c   :  { %230 = vmatpush1.msra.mxu1 %v90_v15  ;;  %415 = vmatprep.subr.mxu0 %v366_v42 }
  0x6d   :  { %231 = vmatprep.subr.mxu1 %v87_v16  ;;  %416 = vmatpush2.msra.mxu0 %v365_v43 }
  0x6e   :  { %232 = vmatpush1.msra.mxu1 %v86_v17 }
  0x6f   :  { %233 = vmatprep.subr.mxu1 %v83_v18 }
  0x70   :  { %234 = vmatpush1.msra.mxu1 %v82_v19 }
  0x71   :  { %235 = vmatprep.subr.mxu1 %v79_v20 }
  0x72   :  { %236 = vmatpush1.msra.mxu1 %v78_v21 }
  0x73   :  { %237 = vmatprep.subr.mxu1 %v75_v22 }
  0x74   :  { %238 = vmatpush1.msra.mxu1 %v74_v23 }
  0x75   :  { %272 = vmatmul.mubr.f32.vlgmr.msra.gmra.mxu1 %v679_v44  ;;  %v364_v44 = vld [vmem:[#allocation10 + $0x1a8] sm:$0xff] }
  0x76   :  { %417 = vmatprep.subr.mxu0 %v364_v44 }
  0x77   :  { %418 = vmatpush2.msra.mxu0 %v363_v45 }
  0x78   :  { %419 = vmatprep.subr.mxu0 %v362_v46 }
  0x79   :  { %420 = vmatpush2.msra.mxu0 %v361_v47 }
  0x7a   :  { %421 = vmatprep.subr.mxu0 %v360_v48 }
  0x7b   :  { %422 = vmatpush2.msra.mxu0 %v359_v49 }
  0x7c   :  { %423 = vmatprep.subr.mxu0 %v358_v50 }
  0x7d   :  { %424 = vmatpush2.msra.mxu0 %v357_v51 }
  0x7e   :  { %425 = vmatprep.subr.mxu0 %v356_v52 }
  0x7f   :  { %426 = vmatpush2.msra.mxu0 %v355_v53 }
  0x80   :  { %427 = vmatprep.subr.mxu0 %v354_v54 }
  0x81   :  { %428 = vmatpush2.msra.mxu0 %v353_v55 }
  0x82   :  { %429 = vmatprep.subr.mxu0 %v352_v56 }
  0x83   :  { %430 = vmatpush2.msra.mxu0 %v351_v57 }
  0x84   :  { %431 = vmatprep.subr.mxu0 %v350_v58 }
  0x85   :  { %432 = vmatpush2.msra.mxu0 %v349_v59 }
  0x86   :  { %433 = vmatprep.subr.mxu0 %v348_v60 }
  0x87   :  { %434 = vmatpush2.msra.mxu0 %v347_v61 }
  0x88   :  { %435 = vmatprep.subr.mxu0 %v346_v62 }
  0x89   :  { %436 = vmatpush2.msra.mxu0 %v345_v63 }
  0x8a   :  { %437 = vmatprep.subr.mxu0 %v344_v0 }
  0x8b   :  { %438 = vmatpush2.msra.mxu0 %v343_v1 }
 0x115   :  { %v202_v4 = vpop.f32.mrf.mxu1 }
 0x116   :  { %v290_v16 = vadd.f32 %v283_v10, %v202_v4 }
 0x117   :  { %v204_v11 = vpop.f32.mrf.mxu1 }
 0x118   :  { %v291_v18 = vadd.f32 %v287_v12, %v204_v11 }
 0x135   :  { %v273_v14 = vpop.f32.mrf.mxu1 }
 0x136   :  { %v305_v15 = vadd.f32 %v298_v9, %v273_v14 }
 0x137   :  { %v275_v17 = vpop.f32.mrf.mxu1 }
 0x138   :  { %v306_v19 = vadd.f32 %v302_v13, %v275_v17  ;;  %v307_v20 = vsub.f32 %v290_v16, %v305_v15 }
 0x13a   :  { %v308_v21 = vsub.f32 %v291_v18, %v306_v19  ;;  %v309_v23 = vmul.f32 %v307_v20, %v307_v20 }
 0x13c   :  { %v310_v22 = vmul.f32 %v308_v21, %v308_v21 }
 0x13e   :  { %439 = vmatprep.mubr.f32.mxu0 %v310_v22 }
 0x13f   :  { %440 = vmatmul.mubr.f32.vlgmr.msra.gmra.mxu0 %v309_v23 }
 0x1ff   :  { %v441_v24 = vpop.f32.mrf.mxu0 }
 0x200   :  { %v442_v25 = vadd.f32 1e-05, %v441_v24 }
 0x201   :  { %v443_v26 = vpop.f32.mrf.mxu0 }
 0x202   :  { %514 = vrsqrt.f32 %v442_v25  ;;  %v444_v27 = vadd.f32 1e-05, %v443_v26 }
 0x204   :  { %516 = vrsqrt.f32 %v444_v27 }
 0x20f   :  { %v515_v32 = vpop.eup %514 }
 0x210   :  { %v461_v33 = vmul.f32 %v515_v32, %v454_v29 }
 0x211   :  { %v517_v35 = vpop.eup %516 }
 0x212   :  { %v462_v36 = vmul.f32 %v517_v35, %v458_v31  ;;  %v463_v37 = vmul.f32 %v461_v33, %v307_v20 }
 0x214   :  { %v464_v39 = vmul.f32 %v462_v36, %v308_v21  ;;  %v478_v40 = vadd.f32 %v471_v34, %v463_v37 }
 0x216   :  { %v479_v41 = vadd.f32 %v475_v38, %v464_v39  ;;  %v480_v42 = vmax.f32 %v478_v40, 0.0 }
 0x218   :  { %v481_v43 = vmax.f32 %v479_v41, 0.0 }
 0x21a   :  { %v484_v44 = vcombine.low %v480_v42, %v481_v43 }
 0x21c   :  { %486 = vst [vmem:[#allocation12] sm:$0xff] %v484_v44 }
 0x21d   :  { %609 = shalt.err (!%p606_p10)
}
 0x21e   :  { %496 = dma.vmem_to_hbm [thread:$0]  %s494_s4, 128, %s692_s5, [#allocation6]  }
 0x21f   :  { %624 = dma.done.wait [#allocation6], 128  }
 0x220   :  { %625 = vsyncadd [#allocation6], 4294967168 }
 0x221   :  { %500 = vsyncpa [#allocation5], 1 }
 0x222   :  { %501 = vsyncpa [#allocation8], 1 }
 0x223   :  { %502 = vsyncpa [#allocation11], 1 }
 0x224   :  { %503 = vsyncpa [#allocation6], 1 }

</bundles_post_ra>
